<compile_context>
chip_gen: v7x
topology: tpu7x:2x2x1
jax: 0.10.0
libtpu: 0.0.40
codegen_flags: <defaults>
</compile_context>

<pallas_src>
import functools

import jax
import jax.numpy as jnp
from jax.experimental import pallas as pl
from jax.experimental.pallas import tpu as pltpu

_LANES = 128
_SUBLANES = 8


def _mlp_kernel(x_ref, w1_ref, b1_ref, w2_ref, b2_ref, o_ref, *, hidden):
    # x tile: (TR, 128) f32, lane-dense.  Loaded once, reused across the H-loop.
    x = x_ref[...]
    acc = jnp.zeros_like(x)
    for h in range(hidden):                 # static unroll (H = 32)
        w1h = w1_ref[h]                     # scalar reads from SMEM (pre-scaled)
        b1h = b1_ref[h]
        w2h = w2_ref[h]
        t = jnp.tanh(x * w1h + b1h)         # VPU mul-add -> EUP tanh
        acc = acc + t * w2h                 # VPU mul-add accumulate (f32)
    o_ref[...] = (acc + b2_ref[0]).astype(o_ref.dtype)


def sigmoid_nn_forward(x, w1, b1, w2, b2, *, tile_rows=512):
    """Forward pass of SigmoidNN.

    x : (N, 1) float32
    w1: Linear(1, H) weight  -- any of (H, 1) / (1, H) / (H,)
    b1: (H,)-shaped bias (any layout that flattens to (H,))
    w2: Linear(H, 1) weight  -- any of (1, H) / (H, 1) / (H,)
    b2: scalar bias (any layout that flattens to (1,))
    returns (N, 1) float32
    """
    N = x.shape[0]
    w1v = jnp.asarray(w1, jnp.float32).reshape(-1)
    b1v = jnp.asarray(b1, jnp.float32).reshape(-1)
    w2v = jnp.asarray(w2, jnp.float32).reshape(-1)
    b2v = jnp.asarray(b2, jnp.float32).reshape(-1)[:1]
    hidden = w1v.shape[0]

    # Fold sigmoid(z) = 0.5*tanh(z/2) + 0.5 into the (tiny, O(H)) parameters.
    w1s = 0.5 * w1v
    b1s = 0.5 * b1v
    w2s = 0.5 * w2v
    b2s = b2v + 0.5 * jnp.sum(w2v, keepdims=True)   # shape (1,)

    # Lane-dense relayout: pad N up so it reshapes to (rows_pad, 128) with
    # rows_pad an exact multiple of the row tile (itself a multiple of 8).
    rows = pl.cdiv(N, _LANES)
    tr = max(_SUBLANES,
             min(tile_rows, ((rows + _SUBLANES - 1) // _SUBLANES) * _SUBLANES))
    tr = ((tr + _SUBLANES - 1) // _SUBLANES) * _SUBLANES
    rows_pad = ((rows + tr - 1) // tr) * tr
    n_pad = rows_pad * _LANES

    x_flat = x.reshape(-1).astype(jnp.float32)
    x_tiles = jnp.pad(x_flat, (0, n_pad - N)).reshape(rows_pad, _LANES)

    grid = (rows_pad // tr,)
    kernel = functools.partial(_mlp_kernel, hidden=hidden)

    y_tiles = pl.pallas_call(
        kernel,
        out_shape=jax.ShapeDtypeStruct((rows_pad, _LANES), jnp.float32),
        grid_spec=pltpu.PrefetchScalarGridSpec(
            num_scalar_prefetch=0,
            grid=grid,
            in_specs=[
                pl.BlockSpec((tr, _LANES), lambda i: (i, 0)),        # x tile (lane-dense)
                pl.BlockSpec(memory_space=pltpu.MemorySpace.SMEM),   # w1' (H,)
                pl.BlockSpec(memory_space=pltpu.MemorySpace.SMEM),   # b1' (H,)
                pl.BlockSpec(memory_space=pltpu.MemorySpace.SMEM),   # w2' (H,)
                pl.BlockSpec(memory_space=pltpu.MemorySpace.SMEM),   # b2' (1,)
            ],
            out_specs=pl.BlockSpec((tr, _LANES), lambda i: (i, 0)),  # lane-dense output
        ),
        compiler_params=pltpu.CompilerParams(
            dimension_semantics=("parallel",)),
    )(x_tiles, w1s, b1s, w2s, b2s)

    return y_tiles.reshape(-1)[:N].reshape(N, 1)


if __name__ == "__main__":
    N = 8          # batch (samples from the csv's 'x' column)
    HIDDEN = 32    # hidden_layer_sz

    key = jax.random.PRNGKey(0)
    kx, k1, k2, k3, k4 = jax.random.split(key, 5)

    x = jax.random.normal(kx, (N, 1), dtype=jnp.float32)

    # nn.Linear-style init: U(-1/sqrt(fan_in), 1/sqrt(fan_in)), torch layouts.
    bound1 = 1.0                             # Linear(1, HIDDEN): fan_in = 1
    bound2 = 1.0 / float(jnp.sqrt(HIDDEN))   # Linear(HIDDEN, 1): fan_in = HIDDEN
    w1 = jax.random.uniform(k1, (HIDDEN, 1), jnp.float32, -bound1, bound1)
    b1 = jax.random.uniform(k2, (HIDDEN,), jnp.float32, -bound1, bound1)
    w2 = jax.random.uniform(k3, (1, HIDDEN), jnp.float32, -bound2, bound2)
    b2 = jax.random.uniform(k4, (1,), jnp.float32, -bound2, bound2)

    y = sigmoid_nn_forward(x, w1, b1, w2, b2)
    jax.block_until_ready(y)

    # Plain-JAX reference (same math as the PyTorch module).
    ref = jax.nn.sigmoid(x @ w1.T + b1[None, :]) @ w2.T + b2[None, :]
    assert y.shape == (N, 1)
    assert jnp.allclose(y, ref, atol=1e-4, rtol=1e-4), float(jnp.max(jnp.abs(y - ref)))

    print("KERNEL_OK")
</pallas_src>

<mosaic_0001>
module attributes {stable_mosaic.version = 11 : i64} {
  func.func @_mlp_kernel(%arg0: i32, %arg1: memref<8x128xf32, #tpu.memory_space<vmem>>, %arg2: memref<32xf32, #tpu.memory_space<smem>>, %arg3: memref<32xf32, #tpu.memory_space<smem>>, %arg4: memref<32xf32, #tpu.memory_space<smem>>, %arg5: memref<1xf32, #tpu.memory_space<smem>>, %arg6: memref<8x128xf32, #tpu.memory_space<vmem>>) attributes {dimension_semantics = [#tpu.dimension_semantics<parallel>], iteration_bounds = array<i64: 1>, scalar_prefetch = 0 : i64, scratch_operands = 0 : i64, tpu.core_type = #tpu.core_type<tc>, window_params = [{transform_indices = @transform_0, window_bounds = array<i64: 8, 128>}, {transform_indices = @transform_1, window_bounds = array<i64: 32>}, {transform_indices = @transform_2, window_bounds = array<i64: 32>}, {transform_indices = @transform_3, window_bounds = array<i64: 32>}, {transform_indices = @transform_4, window_bounds = array<i64: 1>}, {transform_indices = @transform_5, window_bounds = array<i64: 8, 128>}]} {
    %c0 = arith.constant 0 : index
    %c0_0 = arith.constant 0 : index
    %0 = vector.load %arg1[%c0, %c0_0] : memref<8x128xf32, #tpu.memory_space<vmem>>, vector<8x128xf32>
    %cst = arith.constant 0.000000e+00 : f32
    %1 = vector.broadcast %cst : f32 to vector<8x128xf32>
    %c0_1 = arith.constant 0 : index
    %2 = memref.load %arg2[%c0_1] : memref<32xf32, #tpu.memory_space<smem>>
    %c0_2 = arith.constant 0 : index
    %3 = memref.load %arg3[%c0_2] : memref<32xf32, #tpu.memory_space<smem>>
    %c0_3 = arith.constant 0 : index
    %4 = memref.load %arg4[%c0_3] : memref<32xf32, #tpu.memory_space<smem>>
    %5 = vector.broadcast %2 : f32 to vector<8x128xf32>
    %6 = arith.mulf %0, %5 : vector<8x128xf32>
    %7 = vector.broadcast %3 : f32 to vector<8x128xf32>
    %8 = arith.addf %6, %7 : vector<8x128xf32>
    %9 = math.tanh %8 : vector<8x128xf32>
    %10 = vector.broadcast %4 : f32 to vector<8x128xf32>
    %11 = arith.mulf %9, %10 : vector<8x128xf32>
    %12 = arith.addf %1, %11 : vector<8x128xf32>
    %c1 = arith.constant 1 : index
    %13 = memref.load %arg2[%c1] : memref<32xf32, #tpu.memory_space<smem>>
    %c1_4 = arith.constant 1 : index
    %14 = memref.load %arg3[%c1_4] : memref<32xf32, #tpu.memory_space<smem>>
    %c1_5 = arith.constant 1 : index
    %15 = memref.load %arg4[%c1_5] : memref<32xf32, #tpu.memory_space<smem>>
    %16 = vector.broadcast %13 : f32 to vector<8x128xf32>
    %17 = arith.mulf %0, %16 : vector<8x128xf32>
    %18 = vector.broadcast %14 : f32 to vector<8x128xf32>
    %19 = arith.addf %17, %18 : vector<8x128xf32>
    %20 = math.tanh %19 : vector<8x128xf32>
    %21 = vector.broadcast %15 : f32 to vector<8x128xf32>
    %22 = arith.mulf %20, %21 : vector<8x128xf32>
    %23 = arith.addf %12, %22 : vector<8x128xf32>
    %c2 = arith.constant 2 : index
    %24 = memref.load %arg2[%c2] : memref<32xf32, #tpu.memory_space<smem>>
    %c2_6 = arith.constant 2 : index
    %25 = memref.load %arg3[%c2_6] : memref<32xf32, #tpu.memory_space<smem>>
    %c2_7 = arith.constant 2 : index
    %26 = memref.load %arg4[%c2_7] : memref<32xf32, #tpu.memory_space<smem>>
    %27 = vector.broadcast %24 : f32 to vector<8x128xf32>
    %28 = arith.mulf %0, %27 : vector<8x128xf32>
    %29 = vector.broadcast %25 : f32 to vector<8x128xf32>
    %30 = arith.addf %28, %29 : vector<8x128xf32>
    %31 = math.tanh %30 : vector<8x128xf32>
    %32 = vector.broadcast %26 : f32 to vector<8x128xf32>
    %33 = arith.mulf %31, %32 : vector<8x128xf32>
    %34 = arith.addf %23, %33 : vector<8x128xf32>
    %c3 = arith.constant 3 : index
    %35 = memref.load %arg2[%c3] : memref<32xf32, #tpu.memory_space<smem>>
    %c3_8 = arith.constant 3 : index
    %36 = memref.load %arg3[%c3_8] : memref<32xf32, #tpu.memory_space<smem>>
    %c3_9 = arith.constant 3 : index
    %37 = memref.load %arg4[%c3_9] : memref<32xf32, #tpu.memory_space<smem>>
    %38 = vector.broadcast %35 : f32 to vector<8x128xf32>
    %39 = arith.mulf %0, %38 : vector<8x128xf32>
    %40 = vector.broadcast %36 : f32 to vector<8x128xf32>
    %41 = arith.addf %39, %40 : vector<8x128xf32>
    %42 = math.tanh %41 : vector<8x128xf32>
    %43 = vector.broadcast %37 : f32 to vector<8x128xf32>
    %44 = arith.mulf %42, %43 : vector<8x128xf32>
    %45 = arith.addf %34, %44 : vector<8x128xf32>
    %c4 = arith.constant 4 : index
    %46 = memref.load %arg2[%c4] : memref<32xf32, #tpu.memory_space<smem>>
    %c4_10 = arith.constant 4 : index
    %47 = memref.load %arg3[%c4_10] : memref<32xf32, #tpu.memory_space<smem>>
    %c4_11 = arith.constant 4 : index
    %48 = memref.load %arg4[%c4_11] : memref<32xf32, #tpu.memory_space<smem>>
    %49 = vector.broadcast %46 : f32 to vector<8x128xf32>
    %50 = arith.mulf %0, %49 : vector<8x128xf32>
    %51 = vector.broadcast %47 : f32 to vector<8x128xf32>
    %52 = arith.addf %50, %51 : vector<8x128xf32>
    %53 = math.tanh %52 : vector<8x128xf32>
    %54 = vector.broadcast %48 : f32 to vector<8x128xf32>
    %55 = arith.mulf %53, %54 : vector<8x128xf32>
    %56 = arith.addf %45, %55 : vector<8x128xf32>
    %c5 = arith.constant 5 : index
    %57 = memref.load %arg2[%c5] : memref<32xf32, #tpu.memory_space<smem>>
    %c5_12 = arith.constant 5 : index
    %58 = memref.load %arg3[%c5_12] : memref<32xf32, #tpu.memory_space<smem>>
    %c5_13 = arith.constant 5 : index
    %59 = memref.load %arg4[%c5_13] : memref<32xf32, #tpu.memory_space<smem>>
    %60 = vector.broadcast %57 : f32 to vector<8x128xf32>
    %61 = arith.mulf %0, %60 : vector<8x128xf32>
    %62 = vector.broadcast %58 : f32 to vector<8x128xf32>
    %63 = arith.addf %61, %62 : vector<8x128xf32>
    %64 = math.tanh %63 : vector<8x128xf32>
    %65 = vector.broadcast %59 : f32 to vector<8x128xf32>
    %66 = arith.mulf %64, %65 : vector<8x128xf32>
    %67 = arith.addf %56, %66 : vector<8x128xf32>
    %c6 = arith.constant 6 : index
    %68 = memref.load %arg2[%c6] : memref<32xf32, #tpu.memory_space<smem>>
    %c6_14 = arith.constant 6 : index
    %69 = memref.load %arg3[%c6_14] : memref<32xf32, #tpu.memory_space<smem>>
    %c6_15 = arith.constant 6 : index
    %70 = memref.load %arg4[%c6_15] : memref<32xf32, #tpu.memory_space<smem>>
    %71 = vector.broadcast %68 : f32 to vector<8x128xf32>
    %72 = arith.mulf %0, %71 : vector<8x128xf32>
    %73 = vector.broadcast %69 : f32 to vector<8x128xf32>
    %74 = arith.addf %72, %73 : vector<8x128xf32>
    %75 = math.tanh %74 : vector<8x128xf32>
    %76 = vector.broadcast %70 : f32 to vector<8x128xf32>
    %77 = arith.mulf %75, %76 : vector<8x128xf32>
    %78 = arith.addf %67, %77 : vector<8x128xf32>
    %c7 = arith.constant 7 : index
    %79 = memref.load %arg2[%c7] : memref<32xf32, #tpu.memory_space<smem>>
    %c7_16 = arith.constant 7 : index
    %80 = memref.load %arg3[%c7_16] : memref<32xf32, #tpu.memory_space<smem>>
    %c7_17 = arith.constant 7 : index
    %81 = memref.load %arg4[%c7_17] : memref<32xf32, #tpu.memory_space<smem>>
    %82 = vector.broadcast %79 : f32 to vector<8x128xf32>
    %83 = arith.mulf %0, %82 : vector<8x128xf32>
    %84 = vector.broadcast %80 : f32 to vector<8x128xf32>
    %85 = arith.addf %83, %84 : vector<8x128xf32>
    %86 = math.tanh %85 : vector<8x128xf32>
    %87 = vector.broadcast %81 : f32 to vector<8x128xf32>
    %88 = arith.mulf %86, %87 : vector<8x128xf32>
    %89 = arith.addf %78, %88 : vector<8x128xf32>
    %c8 = arith.constant 8 : index
    %90 = memref.load %arg2[%c8] : memref<32xf32, #tpu.memory_space<smem>>
    %c8_18 = arith.constant 8 : index
    %91 = memref.load %arg3[%c8_18] : memref<32xf32, #tpu.memory_space<smem>>
    %c8_19 = arith.constant 8 : index
    %92 = memref.load %arg4[%c8_19] : memref<32xf32, #tpu.memory_space<smem>>
    %93 = vector.broadcast %90 : f32 to vector<8x128xf32>
    %94 = arith.mulf %0, %93 : vector<8x128xf32>
    %95 = vector.broadcast %91 : f32 to vector<8x128xf32>
    %96 = arith.addf %94, %95 : vector<8x128xf32>
    %97 = math.tanh %96 : vector<8x128xf32>
    %98 = vector.broadcast %92 : f32 to vector<8x128xf32>
    %99 = arith.mulf %97, %98 : vector<8x128xf32>
    %100 = arith.addf %89, %99 : vector<8x128xf32>
    %c9 = arith.constant 9 : index
    %101 = memref.load %arg2[%c9] : memref<32xf32, #tpu.memory_space<smem>>
    %c9_20 = arith.constant 9 : index
    %102 = memref.load %arg3[%c9_20] : memref<32xf32, #tpu.memory_space<smem>>
    %c9_21 = arith.constant 9 : index
    %103 = memref.load %arg4[%c9_21] : memref<32xf32, #tpu.memory_space<smem>>
    %104 = vector.broadcast %101 : f32 to vector<8x128xf32>
    %105 = arith.mulf %0, %104 : vector<8x128xf32>
    %106 = vector.broadcast %102 : f32 to vector<8x128xf32>
    %107 = arith.addf %105, %106 : vector<8x128xf32>
    %108 = math.tanh %107 : vector<8x128xf32>
    %109 = vector.broadcast %103 : f32 to vector<8x128xf32>
    %110 = arith.mulf %108, %109 : vector<8x128xf32>
    %111 = arith.addf %100, %110 : vector<8x128xf32>
    %c10 = arith.constant 10 : index
    %112 = memref.load %arg2[%c10] : memref<32xf32, #tpu.memory_space<smem>>
    %c10_22 = arith.constant 10 : index
    %113 = memref.load %arg3[%c10_22] : memref<32xf32, #tpu.memory_space<smem>>
    %c10_23 = arith.constant 10 : index
    %114 = memref.load %arg4[%c10_23] : memref<32xf32, #tpu.memory_space<smem>>
    %115 = vector.broadcast %112 : f32 to vector<8x128xf32>
    %116 = arith.mulf %0, %115 : vector<8x128xf32>
    %117 = vector.broadcast %113 : f32 to vector<8x128xf32>
    %118 = arith.addf %116, %117 : vector<8x128xf32>
    %119 = math.tanh %118 : vector<8x128xf32>
    %120 = vector.broadcast %114 : f32 to vector<8x128xf32>
    %121 = arith.mulf %119, %120 : vector<8x128xf32>
    %122 = arith.addf %111, %121 : vector<8x128xf32>
    %c11 = arith.constant 11 : index
    %123 = memref.load %arg2[%c11] : memref<32xf32, #tpu.memory_space<smem>>
    %c11_24 = arith.constant 11 : index
    %124 = memref.load %arg3[%c11_24] : memref<32xf32, #tpu.memory_space<smem>>
    %c11_25 = arith.constant 11 : index
    %125 = memref.load %arg4[%c11_25] : memref<32xf32, #tpu.memory_space<smem>>
    %126 = vector.broadcast %123 : f32 to vector<8x128xf32>
    %127 = arith.mulf %0, %126 : vector<8x128xf32>
    %128 = vector.broadcast %124 : f32 to vector<8x128xf32>
    %129 = arith.addf %127, %128 : vector<8x128xf32>
    %130 = math.tanh %129 : vector<8x128xf32>
    %131 = vector.broadcast %125 : f32 to vector<8x128xf32>
    %132 = arith.mulf %130, %131 : vector<8x128xf32>
    %133 = arith.addf %122, %132 : vector<8x128xf32>
    %c12 = arith.constant 12 : index
    %134 = memref.load %arg2[%c12] : memref<32xf32, #tpu.memory_space<smem>>
    %c12_26 = arith.constant 12 : index
    %135 = memref.load %arg3[%c12_26] : memref<32xf32, #tpu.memory_space<smem>>
    %c12_27 = arith.constant 12 : index
    %136 = memref.load %arg4[%c12_27] : memref<32xf32, #tpu.memory_space<smem>>
    %137 = vector.broadcast %134 : f32 to vector<8x128xf32>
    %138 = arith.mulf %0, %137 : vector<8x128xf32>
    %139 = vector.broadcast %135 : f32 to vector<8x128xf32>
    %140 = arith.addf %138, %139 : vector<8x128xf32>
    %141 = math.tanh %140 : vector<8x128xf32>
    %142 = vector.broadcast %136 : f32 to vector<8x128xf32>
    %143 = arith.mulf %141, %142 : vector<8x128xf32>
    %144 = arith.addf %133, %143 : vector<8x128xf32>
    %c13 = arith.constant 13 : index
    %145 = memref.load %arg2[%c13] : memref<32xf32, #tpu.memory_space<smem>>
    %c13_28 = arith.constant 13 : index
    %146 = memref.load %arg3[%c13_28] : memref<32xf32, #tpu.memory_space<smem>>
    %c13_29 = arith.constant 13 : index
    %147 = memref.load %arg4[%c13_29] : memref<32xf32, #tpu.memory_space<smem>>
    %148 = vector.broadcast %145 : f32 to vector<8x128xf32>
    %149 = arith.mulf %0, %148 : vector<8x128xf32>
    %150 = vector.broadcast %146 : f32 to vector<8x128xf32>
    %151 = arith.addf %149, %150 : vector<8x128xf32>
    %152 = math.tanh %151 : vector<8x128xf32>
    %153 = vector.broadcast %147 : f32 to vector<8x128xf32>
    %154 = arith.mulf %152, %153 : vector<8x128xf32>
    %155 = arith.addf %144, %154 : vector<8x128xf32>
    %c14 = arith.constant 14 : index
    %156 = memref.load %arg2[%c14] : memref<32xf32, #tpu.memory_space<smem>>
    %c14_30 = arith.constant 14 : index
    %157 = memref.load %arg3[%c14_30] : memref<32xf32, #tpu.memory_space<smem>>
    %c14_31 = arith.constant 14 : index
    %158 = memref.load %arg4[%c14_31] : memref<32xf32, #tpu.memory_space<smem>>
    %159 = vector.broadcast %156 : f32 to vector<8x128xf32>
    %160 = arith.mulf %0, %159 : vector<8x128xf32>
    %161 = vector.broadcast %157 : f32 to vector<8x128xf32>
    %162 = arith.addf %160, %161 : vector<8x128xf32>
    %163 = math.tanh %162 : vector<8x128xf32>
    %164 = vector.broadcast %158 : f32 to vector<8x128xf32>
    %165 = arith.mulf %163, %164 : vector<8x128xf32>
    %166 = arith.addf %155, %165 : vector<8x128xf32>
    %c15 = arith.constant 15 : index
    %167 = memref.load %arg2[%c15] : memref<32xf32, #tpu.memory_space<smem>>
    %c15_32 = arith.constant 15 : index
    %168 = memref.load %arg3[%c15_32] : memref<32xf32, #tpu.memory_space<smem>>
    %c15_33 = arith.constant 15 : index
    %169 = memref.load %arg4[%c15_33] : memref<32xf32, #tpu.memory_space<smem>>
    %170 = vector.broadcast %167 : f32 to vector<8x128xf32>
    %171 = arith.mulf %0, %170 : vector<8x128xf32>
    %172 = vector.broadcast %168 : f32 to vector<8x128xf32>
    %173 = arith.addf %171, %172 : vector<8x128xf32>
    %174 = math.tanh %173 : vector<8x128xf32>
    %175 = vector.broadcast %169 : f32 to vector<8x128xf32>
    %176 = arith.mulf %174, %175 : vector<8x128xf32>
    %177 = arith.addf %166, %176 : vector<8x128xf32>
    %c16 = arith.constant 16 : index
    %178 = memref.load %arg2[%c16] : memref<32xf32, #tpu.memory_space<smem>>
    %c16_34 = arith.constant 16 : index
    %179 = memref.load %arg3[%c16_34] : memref<32xf32, #tpu.memory_space<smem>>
    %c16_35 = arith.constant 16 : index
    %180 = memref.load %arg4[%c16_35] : memref<32xf32, #tpu.memory_space<smem>>
    %181 = vector.broadcast %178 : f32 to vector<8x128xf32>
    %182 = arith.mulf %0, %181 : vector<8x128xf32>
    %183 = vector.broadcast %179 : f32 to vector<8x128xf32>
    %184 = arith.addf %182, %183 : vector<8x128xf32>
    %185 = math.tanh %184 : vector<8x128xf32>
    %186 = vector.broadcast %180 : f32 to vector<8x128xf32>
    %187 = arith.mulf %185, %186 : vector<8x128xf32>
    %188 = arith.addf %177, %187 : vector<8x128xf32>
    %c17 = arith.constant 17 : index
    %189 = memref.load %arg2[%c17] : memref<32xf32, #tpu.memory_space<smem>>
    %c17_36 = arith.constant 17 : index
    %190 = memref.load %arg3[%c17_36] : memref<32xf32, #tpu.memory_space<smem>>
    %c17_37 = arith.constant 17 : index
    %191 = memref.load %arg4[%c17_37] : memref<32xf32, #tpu.memory_space<smem>>
    %192 = vector.broadcast %189 : f32 to vector<8x128xf32>
    %193 = arith.mulf %0, %192 : vector<8x128xf32>
    %194 = vector.broadcast %190 : f32 to vector<8x128xf32>
    %195 = arith.addf %193, %194 : vector<8x128xf32>
    %196 = math.tanh %195 : vector<8x128xf32>
    %197 = vector.broadcast %191 : f32 to vector<8x128xf32>
    %198 = arith.mulf %196, %197 : vector<8x128xf32>
    %199 = arith.addf %188, %198 : vector<8x128xf32>
    %c18 = arith.constant 18 : index
    %200 = memref.load %arg2[%c18] : memref<32xf32, #tpu.memory_space<smem>>
    %c18_38 = arith.constant 18 : index
    %201 = memref.load %arg3[%c18_38] : memref<32xf32, #tpu.memory_space<smem>>
    %c18_39 = arith.constant 18 : index
    %202 = memref.load %arg4[%c18_39] : memref<32xf32, #tpu.memory_space<smem>>
    %203 = vector.broadcast %200 : f32 to vector<8x128xf32>
    %204 = arith.mulf %0, %203 : vector<8x128xf32>
    %205 = vector.broadcast %201 : f32 to vector<8x128xf32>
    %206 = arith.addf %204, %205 : vector<8x128xf32>
    %207 = math.tanh %206 : vector<8x128xf32>
    %208 = vector.broadcast %202 : f32 to vector<8x128xf32>
    %209 = arith.mulf %207, %208 : vector<8x128xf32>
    %210 = arith.addf %199, %209 : vector<8x128xf32>
    %c19 = arith.constant 19 : index
    %211 = memref.load %arg2[%c19] : memref<32xf32, #tpu.memory_space<smem>>
    %c19_40 = arith.constant 19 : index
    %212 = memref.load %arg3[%c19_40] : memref<32xf32, #tpu.memory_space<smem>>
    %c19_41 = arith.constant 19 : index
    %213 = memref.load %arg4[%c19_41] : memref<32xf32, #tpu.memory_space<smem>>
    %214 = vector.broadcast %211 : f32 to vector<8x128xf32>
    %215 = arith.mulf %0, %214 : vector<8x128xf32>
    %216 = vector.broadcast %212 : f32 to vector<8x128xf32>
    %217 = arith.addf %215, %216 : vector<8x128xf32>
    %218 = math.tanh %217 : vector<8x128xf32>
    %219 = vector.broadcast %213 : f32 to vector<8x128xf32>
    %220 = arith.mulf %218, %219 : vector<8x128xf32>
    %221 = arith.addf %210, %220 : vector<8x128xf32>
    %c20 = arith.constant 20 : index
    %222 = memref.load %arg2[%c20] : memref<32xf32, #tpu.memory_space<smem>>
    %c20_42 = arith.constant 20 : index
    %223 = memref.load %arg3[%c20_42] : memref<32xf32, #tpu.memory_space<smem>>
    %c20_43 = arith.constant 20 : index
    %224 = memref.load %arg4[%c20_43] : memref<32xf32, #tpu.memory_space<smem>>
    %225 = vector.broadcast %222 : f32 to vector<8x128xf32>
    %226 = arith.mulf %0, %225 : vector<8x128xf32>
    %227 = vector.broadcast %223 : f32 to vector<8x128xf32>
    %228 = arith.addf %226, %227 : vector<8x128xf32>
    %229 = math.tanh %228 : vector<8x128xf32>
    %230 = vector.broadcast %224 : f32 to vector<8x128xf32>
    %231 = arith.mulf %229, %230 : vector<8x128xf32>
    %232 = arith.addf %221, %231 : vector<8x128xf32>
    %c21 = arith.constant 21 : index
    %233 = memref.load %arg2[%c21] : memref<32xf32, #tpu.memory_space<smem>>
    %c21_44 = arith.constant 21 : index
    %234 = memref.load %arg3[%c21_44] : memref<32xf32, #tpu.memory_space<smem>>
    %c21_45 = arith.constant 21 : index
    %235 = memref.load %arg4[%c21_45] : memref<32xf32, #tpu.memory_space<smem>>
    %236 = vector.broadcast %233 : f32 to vector<8x128xf32>
    %237 = arith.mulf %0, %236 : vector<8x128xf32>
    %238 = vector.broadcast %234 : f32 to vector<8x128xf32>
    %239 = arith.addf %237, %238 : vector<8x128xf32>
    %240 = math.tanh %239 : vector<8x128xf32>
    %241 = vector.broadcast %235 : f32 to vector<8x128xf32>
    %242 = arith.mulf %240, %241 : vector<8x128xf32>
    %243 = arith.addf %232, %242 : vector<8x128xf32>
    %c22 = arith.constant 22 : index
    %244 = memref.load %arg2[%c22] : memref<32xf32, #tpu.memory_space<smem>>
    %c22_46 = arith.constant 22 : index
    %245 = memref.load %arg3[%c22_46] : memref<32xf32, #tpu.memory_space<smem>>
    %c22_47 = arith.constant 22 : index
    %246 = memref.load %arg4[%c22_47] : memref<32xf32, #tpu.memory_space<smem>>
    %247 = vector.broadcast %244 : f32 to vector<8x128xf32>
    %248 = arith.mulf %0, %247 : vector<8x128xf32>
    %249 = vector.broadcast %245 : f32 to vector<8x128xf32>
    %250 = arith.addf %248, %249 : vector<8x128xf32>
    %251 = math.tanh %250 : vector<8x128xf32>
    %252 = vector.broadcast %246 : f32 to vector<8x128xf32>
    %253 = arith.mulf %251, %252 : vector<8x128xf32>
    %254 = arith.addf %243, %253 : vector<8x128xf32>
    %c23 = arith.constant 23 : index
    %255 = memref.load %arg2[%c23] : memref<32xf32, #tpu.memory_space<smem>>
    %c23_48 = arith.constant 23 : index
    %256 = memref.load %arg3[%c23_48] : memref<32xf32, #tpu.memory_space<smem>>
    %c23_49 = arith.constant 23 : index
    %257 = memref.load %arg4[%c23_49] : memref<32xf32, #tpu.memory_space<smem>>
    %258 = vector.broadcast %255 : f32 to vector<8x128xf32>
    %259 = arith.mulf %0, %258 : vector<8x128xf32>
    %260 = vector.broadcast %256 : f32 to vector<8x128xf32>
    %261 = arith.addf %259, %260 : vector<8x128xf32>
    %262 = math.tanh %261 : vector<8x128xf32>
    %263 = vector.broadcast %257 : f32 to vector<8x128xf32>
    %264 = arith.mulf %262, %263 : vector<8x128xf32>
    %265 = arith.addf %254, %264 : vector<8x128xf32>
    %c24 = arith.constant 24 : index
    %266 = memref.load %arg2[%c24] : memref<32xf32, #tpu.memory_space<smem>>
    %c24_50 = arith.constant 24 : index
    %267 = memref.load %arg3[%c24_50] : memref<32xf32, #tpu.memory_space<smem>>
    %c24_51 = arith.constant 24 : index
    %268 = memref.load %arg4[%c24_51] : memref<32xf32, #tpu.memory_space<smem>>
    %269 = vector.broadcast %266 : f32 to vector<8x128xf32>
    %270 = arith.mulf %0, %269 : vector<8x128xf32>
    %271 = vector.broadcast %267 : f32 to vector<8x128xf32>
    %272 = arith.addf %270, %271 : vector<8x128xf32>
    %273 = math.tanh %272 : vector<8x128xf32>
    %274 = vector.broadcast %268 : f32 to vector<8x128xf32>
    %275 = arith.mulf %273, %274 : vector<8x128xf32>
    %276 = arith.addf %265, %275 : vector<8x128xf32>
    %c25 = arith.constant 25 : index
    %277 = memref.load %arg2[%c25] : memref<32xf32, #tpu.memory_space<smem>>
    %c25_52 = arith.constant 25 : index
    %278 = memref.load %arg3[%c25_52] : memref<32xf32, #tpu.memory_space<smem>>
    %c25_53 = arith.constant 25 : index
    %279 = memref.load %arg4[%c25_53] : memref<32xf32, #tpu.memory_space<smem>>
    %280 = vector.broadcast %277 : f32 to vector<8x128xf32>
    %281 = arith.mulf %0, %280 : vector<8x128xf32>
    %282 = vector.broadcast %278 : f32 to vector<8x128xf32>
    %283 = arith.addf %281, %282 : vector<8x128xf32>
    %284 = math.tanh %283 : vector<8x128xf32>
    %285 = vector.broadcast %279 : f32 to vector<8x128xf32>
    %286 = arith.mulf %284, %285 : vector<8x128xf32>
    %287 = arith.addf %276, %286 : vector<8x128xf32>
    %c26 = arith.constant 26 : index
    %288 = memref.load %arg2[%c26] : memref<32xf32, #tpu.memory_space<smem>>
    %c26_54 = arith.constant 26 : index
    %289 = memref.load %arg3[%c26_54] : memref<32xf32, #tpu.memory_space<smem>>
    %c26_55 = arith.constant 26 : index
    %290 = memref.load %arg4[%c26_55] : memref<32xf32, #tpu.memory_space<smem>>
    %291 = vector.broadcast %288 : f32 to vector<8x128xf32>
    %292 = arith.mulf %0, %291 : vector<8x128xf32>
    %293 = vector.broadcast %289 : f32 to vector<8x128xf32>
    %294 = arith.addf %292, %293 : vector<8x128xf32>
    %295 = math.tanh %294 : vector<8x128xf32>
    %296 = vector.broadcast %290 : f32 to vector<8x128xf32>
    %297 = arith.mulf %295, %296 : vector<8x128xf32>
    %298 = arith.addf %287, %297 : vector<8x128xf32>
    %c27 = arith.constant 27 : index
    %299 = memref.load %arg2[%c27] : memref<32xf32, #tpu.memory_space<smem>>
    %c27_56 = arith.constant 27 : index
    %300 = memref.load %arg3[%c27_56] : memref<32xf32, #tpu.memory_space<smem>>
    %c27_57 = arith.constant 27 : index
    %301 = memref.load %arg4[%c27_57] : memref<32xf32, #tpu.memory_space<smem>>
    %302 = vector.broadcast %299 : f32 to vector<8x128xf32>
    %303 = arith.mulf %0, %302 : vector<8x128xf32>
    %304 = vector.broadcast %300 : f32 to vector<8x128xf32>
    %305 = arith.addf %303, %304 : vector<8x128xf32>
    %306 = math.tanh %305 : vector<8x128xf32>
    %307 = vector.broadcast %301 : f32 to vector<8x128xf32>
    %308 = arith.mulf %306, %307 : vector<8x128xf32>
    %309 = arith.addf %298, %308 : vector<8x128xf32>
    %c28 = arith.constant 28 : index
    %310 = memref.load %arg2[%c28] : memref<32xf32, #tpu.memory_space<smem>>
    %c28_58 = arith.constant 28 : index
    %311 = memref.load %arg3[%c28_58] : memref<32xf32, #tpu.memory_space<smem>>
    %c28_59 = arith.constant 28 : index
    %312 = memref.load %arg4[%c28_59] : memref<32xf32, #tpu.memory_space<smem>>
    %313 = vector.broadcast %310 : f32 to vector<8x128xf32>
    %314 = arith.mulf %0, %313 : vector<8x128xf32>
    %315 = vector.broadcast %311 : f32 to vector<8x128xf32>
    %316 = arith.addf %314, %315 : vector<8x128xf32>
    %317 = math.tanh %316 : vector<8x128xf32>
    %318 = vector.broadcast %312 : f32 to vector<8x128xf32>
    %319 = arith.mulf %317, %318 : vector<8x128xf32>
    %320 = arith.addf %309, %319 : vector<8x128xf32>
    %c29 = arith.constant 29 : index
    %321 = memref.load %arg2[%c29] : memref<32xf32, #tpu.memory_space<smem>>
    %c29_60 = arith.constant 29 : index
    %322 = memref.load %arg3[%c29_60] : memref<32xf32, #tpu.memory_space<smem>>
    %c29_61 = arith.constant 29 : index
    %323 = memref.load %arg4[%c29_61] : memref<32xf32, #tpu.memory_space<smem>>
    %324 = vector.broadcast %321 : f32 to vector<8x128xf32>
    %325 = arith.mulf %0, %324 : vector<8x128xf32>
    %326 = vector.broadcast %322 : f32 to vector<8x128xf32>
    %327 = arith.addf %325, %326 : vector<8x128xf32>
    %328 = math.tanh %327 : vector<8x128xf32>
    %329 = vector.broadcast %323 : f32 to vector<8x128xf32>
    %330 = arith.mulf %328, %329 : vector<8x128xf32>
    %331 = arith.addf %320, %330 : vector<8x128xf32>
    %c30 = arith.constant 30 : index
    %332 = memref.load %arg2[%c30] : memref<32xf32, #tpu.memory_space<smem>>
    %c30_62 = arith.constant 30 : index
    %333 = memref.load %arg3[%c30_62] : memref<32xf32, #tpu.memory_space<smem>>
    %c30_63 = arith.constant 30 : index
    %334 = memref.load %arg4[%c30_63] : memref<32xf32, #tpu.memory_space<smem>>
    %335 = vector.broadcast %332 : f32 to vector<8x128xf32>
    %336 = arith.mulf %0, %335 : vector<8x128xf32>
    %337 = vector.broadcast %333 : f32 to vector<8x128xf32>
    %338 = arith.addf %336, %337 : vector<8x128xf32>
    %339 = math.tanh %338 : vector<8x128xf32>
    %340 = vector.broadcast %334 : f32 to vector<8x128xf32>
    %341 = arith.mulf %339, %340 : vector<8x128xf32>
    %342 = arith.addf %331, %341 : vector<8x128xf32>
    %c31 = arith.constant 31 : index
    %343 = memref.load %arg2[%c31] : memref<32xf32, #tpu.memory_space<smem>>
    %c31_64 = arith.constant 31 : index
    %344 = memref.load %arg3[%c31_64] : memref<32xf32, #tpu.memory_space<smem>>
    %c31_65 = arith.constant 31 : index
    %345 = memref.load %arg4[%c31_65] : memref<32xf32, #tpu.memory_space<smem>>
    %346 = vector.broadcast %343 : f32 to vector<8x128xf32>
    %347 = arith.mulf %0, %346 : vector<8x128xf32>
    %348 = vector.broadcast %344 : f32 to vector<8x128xf32>
    %349 = arith.addf %347, %348 : vector<8x128xf32>
    %350 = math.tanh %349 : vector<8x128xf32>
    %351 = vector.broadcast %345 : f32 to vector<8x128xf32>
    %352 = arith.mulf %350, %351 : vector<8x128xf32>
    %353 = arith.addf %342, %352 : vector<8x128xf32>
    %c0_66 = arith.constant 0 : index
    %354 = memref.load %arg5[%c0_66] : memref<1xf32, #tpu.memory_space<smem>>
    %355 = vector.broadcast %354 : f32 to vector<8x128xf32>
    %356 = arith.addf %353, %355 : vector<8x128xf32>
    %c0_67 = arith.constant 0 : index
    %c0_68 = arith.constant 0 : index
    %357 = vector.load %arg6[%c0_67, %c0_68] : memref<8x128xf32, #tpu.memory_space<vmem>>, vector<8x128xf32>
    tpu.vector_store %arg6[%c0_67, %c0_68], %356 {strides = array<i32>} : memref<8x128xf32, #tpu.memory_space<vmem>>, vector<8x128xf32>,
    return
  }
  func.func @transform_0(%arg0: i32) -> (i32, i32) {
    %c0_i32 = arith.constant 0 : i32
    %c0_i32_0 = arith.constant 0 : i32
    return %arg0, %c0_i32 : i32, i32
  }
  func.func @transform_1(%arg0: i32) -> i32 {
    %c0_i32 = arith.constant 0 : i32
    %c0_i32_0 = arith.constant 0 : i32
    return %c0_i32 : i32
  }
  func.func @transform_2(%arg0: i32) -> i32 {
    %c0_i32 = arith.constant 0 : i32
    %c0_i32_0 = arith.constant 0 : i32
    return %c0_i32 : i32
  }
  func.func @transform_3(%arg0: i32) -> i32 {
    %c0_i32 = arith.constant 0 : i32
    %c0_i32_0 = arith.constant 0 : i32
    return %c0_i32 : i32
  }
  func.func @transform_4(%arg0: i32) -> i32 {
    %c0_i32 = arith.constant 0 : i32
    %c0_i32_0 = arith.constant 0 : i32
    return %c0_i32 : i32
  }
  func.func @transform_5(%arg0: i32) -> (i32, i32) {
    %c0_i32 = arith.constant 0 : i32
    %c0_i32_0 = arith.constant 0 : i32
    return %arg0, %c0_i32 : i32, i32
  }
}

</mosaic_0001>

<bundles_post_ra>
// kernel: tpu_custom_call.1
= control target key start
LH: loop header
LB: loop body
LE: loop exit
PB: predicated region body
PF: predicated region fallthrough
CT: control target
= control target key end

     0   :  { %11 = vsyncpa [#allocation4], 0  ;;  %s1060_s0 = inlined_call_operand.hbm [shape: f32[8,128], index: 0, kind: input, shape index: {}]   ;;  %s1061_s1 = inlined_call_operand.vmem [shape: f32[32], index: 1, kind: input, shape index: {}]   ;;  %s1062_s2 = inlined_call_operand.vmem [shape: f32[32], index: 2, kind: input, shape index: {}]   ;;  %s1063_s3 = inlined_call_operand.vmem [shape: f32[32], index: 3, kind: input, shape index: {}]   ;;  %s1064_s4 = inlined_call_operand.<no memory space> [shape: f32[1], index: 4, kind: input, shape index: {}]   ;;  %s1065_s5 = inlined_call_operand.hbm [shape: f32[8,128], index: 5, kind: output, shape index: {}]  }
   0x1   :  { %12 = vsyncpa [#allocation6], 0 }
   0x2   :  { %13 = vsyncpa [#allocation9], 0  ;;  %s41_s20 = sshll.u32 %s1062_s2, 4  ;;  %s42_s20 = int_to_ptr.vmem [resolvable:$true] %s41_s20 }
   0x3   :  { %14 = vsyncpa [#allocation5], 0  ;;  %s606_s21 = scalar_lea.vmem %s42_s20, 16  ;;  %p611_p1 = scmp.lt.s32.totalorder %s42_s20, %s42_s20 }
   0x4   :  { %p607_p0 = scmp.ne.s32.totalorder %s42_s20, %s606_s21  ;;  %p612_p2 = scmp.lt.s32.totalorder %s606_s21, %s606_s21 }
   0x6   :  { %p613_p3 = por %p612_p2, %p611_p1 }
   0x8   :  { %p614_p4 = pnand %p613_p3, %p607_p0 }
   0xa   :  { %617 = shalt.err (!%p614_p4)
}
   0xb   :  { %s694_s22 = smov [#allocation8]   ;;  %s695_s23 = smov [#allocation3]  }
   0xc   :  { %44 = dma.vmem_to_smem %s42_s20, 16, %s694_s22, [#allocation9]  }
   0xd   :  { %s21_s24 = sshll.u32 %s695_s23, 4  ;;  %s31_s27 = sshll.u32 %s1061_s1, 4  ;;  %s22_s24 = int_to_ptr.vmem [resolvable:$true] %s21_s24  ;;  %s32_s27 = int_to_ptr.vmem [resolvable:$true] %s31_s27 }
   0xe   :  { %s618_s29 = scalar_lea.hbm %s1060_s0, 128 }
   0xf   :  { %p619_p5 = scmp.ne.s32.totalorder %s1060_s0, %s618_s29  ;;  %p622_p6 = scmp.lt.u32.totalorder %s618_s29, %s1060_s0 }
  0x11   :  { %p624_p7 = pnand %p622_p6, %p619_p5 }
  0x13   :  { %627 = shalt.err (!%p624_p7)
}
  0x14   :  { %s628_s9 = scalar_lea.vmem %s22_s24, 128  ;;  %p633_p9 = scmp.lt.s32.totalorder %s22_s24, %s22_s24 }
  0x15   :  { %p629_p8 = scmp.ne.s32.totalorder %s22_s24, %s628_s9  ;;  %p634_p10 = scmp.lt.s32.totalorder %s628_s9, %s628_s9 }
  0x17   :  { %p635_p11 = por %p634_p10, %p633_p9 }
  0x19   :  { %p636_p12 = pnand %p635_p11, %p629_p8 }
  0x1b   :  { %639 = shalt.err (!%p636_p12)
}
  0x1c   :  { %24 = dma.hbm_to_vmem [thread:$0]  %s1060_s0, 128, %s22_s24, [#allocation4]  }
  0x1d   :  { %s51_s13 = sshll.u32 %s1063_s3, 4  ;;  %s640_s14 = scalar_lea.vmem %s32_s27, 16  ;;  %s52_s13 = int_to_ptr.vmem [resolvable:$true] %s51_s13 }
  0x1e   :  { %p641_p13 = scmp.ne.s32.totalorder %s32_s27, %s640_s14  ;;  %p645_p0 = scmp.lt.s32.totalorder %s32_s27, %s32_s27 }
  0x1f   :  { %p646_p1 = scmp.lt.s32.totalorder %s640_s14, %s640_s14 }
  0x21   :  { %p647_p2 = por %p646_p1, %p645_p0 }
  0x23   :  { %p648_p3 = pnand %p647_p2, %p641_p13 }
  0x25   :  { %651 = shalt.err (!%p648_p3)
}
  0x26   :  { %s696_s15 = smov [#allocation7]   ;;  %s652_s16 = scalar_lea.vmem %s52_s13, 16 }
  0x27   :  { %34 = dma.vmem_to_smem %s32_s27, 16, %s696_s15, [#allocation6]  }
  0x28   :  { %p653_p4 = scmp.ne.s32.totalorder %s52_s13, %s652_s16  ;;  %p657_p5 = scmp.lt.s32.totalorder %s52_s13, %s52_s13 }
  0x29   :  { %p658_p6 = scmp.lt.s32.totalorder %s652_s16, %s652_s16 }
  0x2b   :  { %p659_p7 = por %p658_p6, %p657_p5 }
  0x2d   :  { %p660_p8 = pnand %p659_p7, %p653_p4 }
  0x2f   :  { %663 = shalt.err (!%p660_p8)
}
  0x30   :  { %s697_s0 = smov [#allocation10]  }
  0x31   :  { %54 = dma.vmem_to_smem %s52_s13, 16, %s697_s0, [#allocation9]  }
  0x32   :  { %686 = dma.done.wait [#allocation4], 128  }
  0x33   :  { %687 = vsyncadd [#allocation4], 4294967168 }
  0x34   :  { %688 = dma.done.wait [#allocation6], 16  }
  0x35   :  { %689 = vsyncadd [#allocation6], 4294967280 }
  0x36   :  { %690 = dma.done.wait [#allocation9], 32  }
  0x37   :  { %691 = vsyncadd [#allocation9], 4294967264 }
  0x38   :  { %69 = sfence }
  0x39   :  { %s71_s3 = sld [smem:[#allocation7]]  ;;  %s444_s18 = sld [smem:[#allocation7 + $0x1]]  ;;  %v752_v0 = vld [vmem:[#allocation3] sm:$0xff] }
  0x3a   :  { %s72_s17 = sld [smem:[#allocation8]]  ;;  %s445_s19 = sld [smem:[#allocation8 + $0x1]] }
  0x3b   :  { %s447_s20 = sld [smem:[#allocation7 + $0x2]]  ;;  %s450_s22 = sld [smem:[#allocation7 + $0x3]] }
  0x3c   :  { %s750_s21 = sld [smem:[#allocation8 + $0x2]]  ;;  %s754_s23 = sld [smem:[#allocation8 + $0x3]] }
  0x3d   :  { %s756_s24 = sld [smem:[#allocation7 + $0x4]]  ;;  %s760_s26 = sld [smem:[#allocation10]] }
  0x3e   :  { %s758_s25 = sld [smem:[#allocation8 + $0x4]]  ;;  %s763_s27 = sld [smem:[#allocation7 + $0x5]] }
  0x3f   :  { %v74_v1 = vstv %s71_s3  ;;  %v85_v4 = vstv %s444_s18  ;;  %s765_s2 = sld [smem:[#allocation10 + $0x1]]  ;;  %s768_s28 = sld [smem:[#allocation8 + $0x5]] }
  0x40   :  { %v76_v2 = vstv %s72_s17  ;;  %v75_v3 = vmul.f32 %v74_v1, %v752_v0  ;;  %v86_v5 = vmul.f32 %v85_v4, %v752_v0  ;;  %v87_v6 = vstv %s445_s19  ;;  %s771_s29 = sld [smem:[#allocation7 + $0x6]]  ;;  %s775_s6 = sld [smem:[#allocation10 + $0x2]] }
  0x41   :  { %v96_v8 = vstv %s447_s20  ;;  %s773_s30 = sld [smem:[#allocation8 + $0x6]]  ;;  %v107_v12 = vstv %s450_s22  ;;  %s778_s7 = sld [smem:[#allocation7 + $0x7]] }
  0x42   :  { %v77_v7 = vadd.f32 %v76_v2, %v75_v3  ;;  %v98_v9 = vstv %s750_s21  ;;  %v88_v10 = vadd.f32 %v87_v6, %v86_v5  ;;  %v97_v11 = vmul.f32 %v96_v8, %v752_v0  ;;  %s780_s8 = sld [smem:[#allocation10 + $0x3]]  ;;  %s784_s9 = sld [smem:[#allocation8 + $0x7]] }
  0x43   :  { %v108_v13 = vmul.f32 %v107_v12, %v752_v0  ;;  %v109_v14 = vstv %s754_s23  ;;  %v118_v16 = vstv %s756_s24  ;;  %s788_s1 = sld [smem:[#allocation7 + $0x8]]  ;;  %s794_s11 = sld [smem:[#allocation7 + $0x9]]  ;;  %v79_v26 = vstv %s760_s26 }
  0x44   :  { %542 = vtanh.f32 %v77_v7  ;;  %v99_v15 = vadd.f32 %v98_v9, %v97_v11  ;;  %v120_v17 = vstv %s758_s25  ;;  %s790_s10 = sld [smem:[#allocation8 + $0x8]]  ;;  %v119_v19 = vmul.f32 %v118_v16, %v752_v0  ;;  %s796_s12 = sld [smem:[#allocation10 + $0x4]] }
  0x45   :  { %544 = vtanh.f32 %v88_v10  ;;  %v110_v18 = vadd.f32 %v109_v14, %v108_v13  ;;  %v129_v20 = vstv %s763_s27  ;;  %v131_v22 = vstv %s768_s28  ;;  %s800_s13 = sld [smem:[#allocation8 + $0x9]]  ;;  %s804_s14 = sld [smem:[#allocation7 + $0xa]] }
  0x46   :  { %546 = vtanh.f32 %v99_v15  ;;  %v130_v21 = vmul.f32 %v129_v20, %v752_v0  ;;  %v121_v23 = vadd.f32 %v120_v17, %v119_v19  ;;  %v140_v24 = vstv %s771_s29  ;;  %s806_s15 = sld [smem:[#allocation8 + $0xa]]  ;;  %s809_s16 = sld [smem:[#allocation10 + $0x5]] }
  0x47   :  { %548 = vtanh.f32 %v110_v18  ;;  %v142_v25 = vstv %s773_s30  ;;  %v141_v28 = vmul.f32 %v140_v24, %v752_v0  ;;  %v151_v29 = vstv %s778_s7  ;;  %s813_s0 = sld [smem:[#allocation7 + $0xb]]  ;;  %s822_s17 = sld [smem:[#allocation7 + $0xc]] }
  0x48   :  { %v132_v27 = vadd.f32 %v131_v22, %v130_v21  ;;  %v90_v30 = vstv %s765_s2  ;;  %550 = vtanh.f32 %v121_v23  ;;  %v152_v31 = vmul.f32 %v151_v29, %v752_v0  ;;  %s818_s3 = sld [smem:[#allocation8 + $0xb]]  ;;  %s824_s18 = sld [smem:[#allocation8 + $0xc]] }
  0x49   :  { %v153_v32 = vstv %s784_s9  ;;  %v143_v33 = vadd.f32 %v142_v25, %v141_v28  ;;  %v162_v34 = vstv %s788_s1  ;;  %v101_v36 = vstv %s775_s6  ;;  %s827_s19 = sld [smem:[#allocation10 + $0x6]]  ;;  %s831_s20 = sld [smem:[#allocation7 + $0xd]] }
  0x4a   :  { %552 = vtanh.f32 %v132_v27  ;;  %v164_v35 = vstv %s790_s10  ;;  %v154_v37 = vadd.f32 %v153_v32, %v152_v31  ;;  %v163_v38 = vmul.f32 %v162_v34, %v752_v0  ;;  %s836_s21 = sld [smem:[#allocation8 + $0xd]]  ;;  %s838_s22 = sld [smem:[#allocation10 + $0x7]] }
  0x4b   :  { %v173_v39 = vstv %s794_s11  ;;  %v112_v40 = vstv %s780_s8  ;;  %554 = vtanh.f32 %v143_v33  ;;  %v175_v42 = vstv %s800_s13  ;;  %s842_s23 = sld [smem:[#allocation7 + $0xe]]  ;;  %s848_s25 = sld [smem:[#allocation10 + $0x8]] }
  0x4c   :  { %v174_v41 = vmul.f32 %v173_v39, %v752_v0  ;;  %556 = vtanh.f32 %v154_v37  ;;  %v165_v44 = vadd.f32 %v164_v35, %v163_v38  ;;  %v184_v45 = vstv %s804_s14  ;;  %s846_s24 = sld [smem:[#allocation8 + $0xe]]  ;;  %s852_s26 = sld [smem:[#allocation7 + $0xf]] }
  0x4d   :  { %v186_v46 = vstv %s806_s15  ;;  %v123_v49 = vstv %s796_s12  ;;  %v185_v51 = vmul.f32 %v184_v45, %v752_v0  ;;  %v195_v53 = vstv %s813_s0  ;;  %s855_s27 = sld [smem:[#allocation10 + $0x9]]  ;;  %s860_s2 = sld [smem:[#allocation8 + $0xf]] }
  0x4e   :  { %v543_v43 = vpop.eup %542  ;;  %v176_v50 = vadd.f32 %v175_v42, %v174_v41  ;;  %558 = vtanh.f32 %v165_v44  ;;  %v197_v54 = vstv %s818_s3  ;;  %v134_v56 = vstv %s809_s16  ;;  %s862_s28 = sld [smem:[#allocation7 + $0x10]]  ;;  %s864_s29 = sld [smem:[#allocation10 + $0xa]] }
  0x4f   :  { %v545_v47 = vpop.eup %544  ;;  %v80_v48 = vmul.f32 %v543_v43, %v79_v26  ;;  %v187_v57 = vadd.f32 %v186_v46, %v185_v51  ;;  %v196_v58 = vmul.f32 %v195_v53, %v752_v0  ;;  %v206_v62 = vstv %s822_s17  ;;  %s868_s30 = sld [smem:[#allocation10 + $0xb]]  ;;  %s872_s6 = sld [smem:[#allocation8 + $0x10]] }
  0x50   :  { %v91_v52 = vmul.f32 %v545_v47, %v90_v30  ;;  %v547_v55 = vpop.eup %546  ;;  %560 = vtanh.f32 %v176_v50  ;;  %v208_v63 = vstv %s824_s18  ;;  %v207_v3 = vmul.f32 %v206_v62, %v752_v0  ;;  %s875_s7 = sld [smem:[#allocation7 + $0x11]]  ;;  %s880_s9 = sld [smem:[#allocation10 + $0xc]] }
  0x51   :  { %v549_v59 = vpop.eup %548  ;;  %v102_v61 = vmul.f32 %v547_v55, %v101_v36  ;;  %562 = vtanh.f32 %v187_v57  ;;  %v198_v2 = vadd.f32 %v197_v54, %v196_v58  ;;  %v145_v6 = vstv %s827_s19  ;;  %s877_s8 = sld [smem:[#allocation8 + $0x11]]  ;;  %s882_s1 = sld [smem:[#allocation10 + $0xd]] }
  0x52   :  { %v92_v60 = vadd.f32 %v91_v52, %v80_v48  ;;  %v113_v1 = vmul.f32 %v549_v59, %v112_v40  ;;  %v551_v4 = vpop.eup %550  ;;  %v217_v7 = vstv %s831_s20  ;;  %v219_v8 = vstv %s836_s21  ;;  %s887_s10 = sld [smem:[#allocation7 + $0x12]]  ;;  %s892_s12 = sld [smem:[#allocation10 + $0xe]] }
  0x53   :  { %v124_v10 = vmul.f32 %v551_v4, %v123_v49  ;;  %564 = vtanh.f32 %v198_v2  ;;  %v209_v11 = vadd.f32 %v208_v63, %v207_v3  ;;  %v218_v12 = vmul.f32 %v217_v7, %v752_v0  ;;  %s889_s11 = sld [smem:[#allocation8 + $0x12]]  ;;  %s897_s13 = sld [smem:[#allocation7 + $0x13]] }
  0x54   :  { %v103_v5 = vadd.f32 %v102_v61, %v92_v60  ;;  %v553_v9 = vpop.eup %552  ;;  %v156_v15 = vstv %s838_s22  ;;  %v228_v16 = vstv %s842_s23  ;;  %v230_v20 = vstv %s846_s24  ;;  %s899_s14 = sld [smem:[#allocation7 + $0x14]]  ;;  %s903_s15 = sld [smem:[#allocation8 + $0x13]] }
  0x55   :  { %v135_v14 = vmul.f32 %v553_v9, %v134_v56  ;;  %v555_v17 = vpop.eup %554  ;;  %566 = vtanh.f32 %v209_v11  ;;  %v220_v18 = vadd.f32 %v219_v8, %v218_v12  ;;  %v229_v19 = vmul.f32 %v228_v16, %v752_v0  ;;  %s906_s16 = sld [smem:[#allocation10 + $0xf]]  ;;  %s909_s0 = sld [smem:[#allocation8 + $0x14]] }
  0x56   :  { %v114_v13 = vadd.f32 %v113_v1, %v103_v5  ;;  %v557_v21 = vpop.eup %556  ;;  %v146_v23 = vmul.f32 %v555_v17, %v145_v6  ;;  %v167_v24 = vstv %s848_s25  ;;  %v239_v25 = vstv %s852_s26  ;;  %s913_s3 = sld [smem:[#allocation7 + $0x15]]  ;;  %s920_s18 = sld [smem:[#allocation10 + $0x10]] }
  0x57   :  { %v178_v26 = vstv %s855_s27  ;;  %568 = vtanh.f32 %v220_v18  ;;  %v231_v27 = vadd.f32 %v230_v20, %v229_v19  ;;  %v240_v28 = vmul.f32 %v239_v25, %v752_v0  ;;  %s917_s17 = sld [smem:[#allocation8 + $0x15]]  ;;  %s923_s19 = sld [smem:[#allocation7 + $0x16]] }
  0x58   :  { %v125_v22 = vadd.f32 %v124_v10, %v114_v13  ;;  %v559_v29 = vpop.eup %558  ;;  %v157_v31 = vmul.f32 %v557_v21, %v156_v15  ;;  %v241_v32 = vstv %s860_s2  ;;  %v250_v33 = vstv %s862_s28  ;;  %s928_s20 = sld [smem:[#allocation8 + $0x16]]  ;;  %s930_s21 = sld [smem:[#allocation10 + $0x11]] }
  0x59   :  { %v189_v35 = vstv %s864_s29  ;;  %570 = vtanh.f32 %v231_v27  ;;  %v242_v36 = vadd.f32 %v241_v32, %v240_v28  ;;  %v251_v37 = vmul.f32 %v250_v33, %v752_v0  ;;  %s936_s22 = sld [smem:[#allocation7 + $0x17]]  ;;  %s940_s24 = sld [smem:[#allocation10 + $0x12]] }
  0x5a   :  { %v136_v30 = vadd.f32 %v135_v14, %v125_v22  ;;  %v561_v34 = vpop.eup %560  ;;  %v168_v39 = vmul.f32 %v559_v29, %v167_v24  ;;  %v200_v40 = vstv %s868_s30  ;;  %v252_v41 = vstv %s872_s6  ;;  %s938_s23 = sld [smem:[#allocation8 + $0x17]]  ;;  %s947_s25 = sld [smem:[#allocation7 + $0x18]] }
  0x5b   :  { %v563_v42 = vpop.eup %562  ;;  %572 = vtanh.f32 %v242_v36  ;;  %v253_v43 = vadd.f32 %v252_v41, %v251_v37  ;;  %v261_v44 = vstv %s875_s7  ;;  %v263_v45 = vstv %s877_s8  ;;  %s949_s26 = sld [smem:[#allocation8 + $0x18]]  ;;  %s952_s27 = sld [smem:[#allocation7 + $0x19]] }
  0x5c   :  { %v147_v38 = vadd.f32 %v146_v23, %v136_v30  ;;  %v179_v47 = vmul.f32 %v561_v34, %v178_v26  ;;  %v211_v48 = vstv %s880_s9  ;;  %v262_v49 = vmul.f32 %v261_v44, %v752_v0  ;;  %s954_s2 = sld [smem:[#allocation10 + $0x13]]  ;;  %s958_s28 = sld [smem:[#allocation8 + $0x19]] }
  0x5d   :  { %v565_v50 = vpop.eup %564  ;;  %v222_v51 = vstv %s882_s1  ;;  %574 = vtanh.f32 %v253_v43  ;;  %v272_v52 = vstv %s887_s10  ;;  %v274_v53 = vstv %s889_s11  ;;  %s962_s29 = sld [smem:[#allocation7 + $0x1a]]  ;;  %s964_s30 = sld [smem:[#allocation10 + $0x14]] }
  0x5e   :  { %v158_v46 = vadd.f32 %v157_v31, %v147_v38  ;;  %v190_v55 = vmul.f32 %v563_v42, %v189_v35  ;;  %v264_v56 = vadd.f32 %v263_v45, %v262_v49  ;;  %v273_v57 = vmul.f32 %v272_v52, %v752_v0  ;;  %s968_s6 = sld [smem:[#allocation8 + $0x1a]]  ;;  %s971_s7 = sld [smem:[#allocation7 + $0x1b]] }
  0x5f   :  { %v567_v58 = vpop.eup %566  ;;  %v201_v59 = vmul.f32 %v565_v50, %v200_v40  ;;  %v233_v60 = vstv %s892_s12  ;;  %v283_v61 = vstv %s897_s13  ;;  %v294_v62 = vstv %s899_s14  ;;  %s975_s8 = sld [smem:[#allocation8 + $0x1b]]  ;;  %s979_s9 = sld [smem:[#allocation7 + $0x1c]] }
  0x60   :  { %v169_v54 = vadd.f32 %v168_v39, %v158_v46  ;;  %576 = vtanh.f32 %v264_v56  ;;  %v275_v1 = vadd.f32 %v274_v53, %v273_v57  ;;  %v285_v2 = vstv %s903_s15  ;;  %s981_s1 = sld [smem:[#allocation10 + $0x15]]  ;;  %s985_s10 = sld [smem:[#allocation10 + $0x16]] }
  0x61   :  { %v569_v3 = vpop.eup %568  ;;  %v244_v4 = vstv %s906_s16  ;;  %v284_v5 = vmul.f32 %v283_v61, %v752_v0  ;;  %v295_v6 = vmul.f32 %v294_v62, %v752_v0  ;;  %v296_v7 = vstv %s909_s0  ;;  %s989_s11 = sld [smem:[#allocation8 + $0x1c]]  ;;  %s994_s12 = sld [smem:[#allocation7 + $0x1d]] }
  0x62   :  { %v180_v63 = vadd.f32 %v179_v47, %v169_v54  ;;  %v212_v9 = vmul.f32 %v567_v58, %v211_v48  ;;  %578 = vtanh.f32 %v275_v1  ;;  %v305_v10 = vstv %s913_s3  ;;  %s996_s13 = sld [smem:[#allocation8 + $0x1d]]  ;;  %s998_s14 = sld [smem:[#allocation10 + $0x17]] }
  0x63   :  { %v571_v11 = vpop.eup %570  ;;  %v286_v12 = vadd.f32 %v285_v2, %v284_v5  ;;  %v297_v13 = vadd.f32 %v296_v7, %v295_v6  ;;  %v306_v14 = vmul.f32 %v305_v10, %v752_v0  ;;  %v307_v15 = vstv %s917_s17  ;;  %s1004_s15 = sld [smem:[#allocation7 + $0x1e]]  ;;  %s1009_s0 = sld [smem:[#allocation7 + $0x1f]] }
  0x64   :  { %v191_v8 = vadd.f32 %v190_v55, %v180_v63  ;;  %v223_v17 = vmul.f32 %v569_v3, %v222_v51  ;;  %v255_v18 = vstv %s920_s18  ;;  %v316_v19 = vstv %s923_s19  ;;  %s1006_s16 = sld [smem:[#allocation8 + $0x1e]]  ;;  %s1011_s3 = sld [smem:[#allocation10 + $0x18]] }
  0x65   :  { %v573_v20 = vpop.eup %572  ;;  %580 = vtanh.f32 %v286_v12  ;;  %v308_v21 = vadd.f32 %v307_v15, %v306_v14  ;;  %v317_v22 = vmul.f32 %v316_v19, %v752_v0  ;;  %v318_v23 = vstv %s928_s20  ;;  %s1015_s17 = sld [smem:[#allocation8 + $0x1f]]  ;;  %s1019_s18 = sld [smem:[#allocation10 + $0x19]] }
  0x66   :  { %v202_v16 = vadd.f32 %v201_v59, %v191_v8  ;;  %v234_v25 = vmul.f32 %v571_v11, %v233_v60  ;;  %v266_v26 = vstv %s930_s21  ;;  %582 = vtanh.f32 %v297_v13  ;;  %s1024_s19 = sld [smem:[#allocation10 + $0x1a]]  ;;  %s1030_s20 = sld [smem:[#allocation10 + $0x1b]] }
  0x67   :  { %v575_v27 = vpop.eup %574  ;;  %584 = vtanh.f32 %v308_v21  ;;  %v319_v28 = vadd.f32 %v318_v23, %v317_v22  ;;  %v327_v29 = vstv %s936_s22  ;;  %v329_v30 = vstv %s938_s23  ;;  %s1037_s21 = sld [smem:[#allocation10 + $0x1c]]  ;;  %s530_s22 = sld [smem:[#allocation10 + $0x1d]] }
  0x68   :  { %v213_v24 = vadd.f32 %v212_v9, %v202_v16  ;;  %v245_v32 = vmul.f32 %v573_v20, %v244_v4  ;;  %v277_v33 = vstv %s940_s24  ;;  %v328_v34 = vmul.f32 %v327_v29, %v752_v0  ;;  %s533_s23 = sld [smem:[#allocation10 + $0x1e]]  ;;  %s536_s24 = sld [smem:[#allocation10 + $0x1f]] }
  0x69   :  { %v256_v35 = vmul.f32 %v575_v27, %v255_v18  ;;  %586 = vtanh.f32 %v319_v28  ;;  %v338_v36 = vstv %s947_s25  ;;  %v340_v37 = vstv %s949_s26 }
  0x6a   :  { %v224_v31 = vadd.f32 %v223_v17, %v213_v24  ;;  %v577_v38 = vpop.eup %576  ;;  %v330_v40 = vadd.f32 %v329_v30, %v328_v34  ;;  %v339_v41 = vmul.f32 %v338_v36, %v752_v0  ;;  %v349_v42 = vstv %s952_s27  ;;  %s698_s27 = smov [#allocation11]  }
  0x6b   :  { %v267_v43 = vmul.f32 %v577_v38, %v266_v26  ;;  %v288_v44 = vstv %s954_s2  ;;  %v350_v45 = vmul.f32 %v349_v42, %v752_v0  ;;  %v351_v46 = vstv %s958_s28  ;;  %s433_s2 = sshll.u32 %s698_s27, 4  ;;  %s434_s2 = int_to_ptr.vmem [resolvable:$true] %s433_s2 }
  0x6c   :  { %v235_v39 = vadd.f32 %v234_v25, %v224_v31  ;;  %v579_v47 = vpop.eup %578  ;;  %588 = vtanh.f32 %v330_v40  ;;  %v341_v49 = vadd.f32 %v340_v37, %v339_v41  ;;  %v360_v50 = vstv %s962_s29  ;;  %s664_s28 = scalar_lea.vmem %s434_s2, 128  ;;  %p669_p10 = scmp.lt.s32.totalorder %s434_s2, %s434_s2 }
  0x6d   :  { %v299_v51 = vstv %s964_s30  ;;  %v352_v52 = vadd.f32 %v351_v46, %v350_v45  ;;  %v361_v53 = vmul.f32 %v360_v50, %v752_v0  ;;  %v362_v54 = vstv %s968_s6  ;;  %p665_p9 = scmp.ne.s32.totalorder %s434_s2, %s664_s28  ;;  %p670_p11 = scmp.lt.s32.totalorder %s664_s28, %s664_s28 }
  0x6e   :  { %v246_v48 = vadd.f32 %v245_v32, %v235_v39  ;;  %v278_v56 = vmul.f32 %v579_v47, %v277_v33  ;;  %590 = vtanh.f32 %v341_v49  ;;  %v371_v57 = vstv %s971_s7 }
  0x6f   :  { %v581_v58 = vpop.eup %580  ;;  %592 = vtanh.f32 %v352_v52  ;;  %v363_v59 = vadd.f32 %v362_v54, %v361_v53  ;;  %v372_v60 = vmul.f32 %v371_v57, %v752_v0  ;;  %v373_v61 = vstv %s975_s8  ;;  %p671_p12 = por %p670_p11, %p669_p10 }
  0x70   :  { %v257_v55 = vadd.f32 %v256_v35, %v246_v48  ;;  %v583_v62 = vpop.eup %582  ;;  %v289_v1 = vmul.f32 %v581_v58, %v288_v44  ;;  %v382_v2 = vstv %s979_s9  ;;  %v310_v4 = vstv %s981_s1 }
  0x71   :  { %v585_v3 = vpop.eup %584  ;;  %594 = vtanh.f32 %v363_v59  ;;  %v374_v5 = vadd.f32 %v373_v61, %v372_v60  ;;  %v383_v6 = vmul.f32 %v382_v2, %v752_v0  ;;  %v300_v8 = vmul.f32 %v583_v62, %v299_v51  ;;  %p672_p13 = pnand %p671_p12, %p665_p9 }
  0x72   :  { %v268_v63 = vadd.f32 %v267_v43, %v257_v55  ;;  %v321_v9 = vstv %s985_s10  ;;  %v384_v10 = vstv %s989_s11  ;;  %v393_v13 = vstv %s994_s12 }
  0x73   :  { %v587_v11 = vpop.eup %586  ;;  %596 = vtanh.f32 %v374_v5  ;;  %v385_v12 = vadd.f32 %v384_v10, %v383_v6  ;;  %v395_v14 = vstv %s996_s13  ;;  %v311_v16 = vmul.f32 %v585_v3, %v310_v4 }
  0x74   :  { %v279_v7 = vadd.f32 %v278_v56, %v268_v63  ;;  %v332_v17 = vstv %s998_s14  ;;  %v394_v18 = vmul.f32 %v393_v13, %v752_v0  ;;  %v322_v19 = vmul.f32 %v587_v11, %v321_v9 }
  0x75   :  { %598 = vtanh.f32 %v385_v12  ;;  %v404_v20 = vstv %s1004_s15  ;;  %v406_v21 = vstv %s1006_s16  ;;  %v415_v26 = vstv %s1009_s0 }
  0x76   :  { %v290_v15 = vadd.f32 %v289_v1, %v279_v7  ;;  %v589_v22 = vpop.eup %588  ;;  %v396_v24 = vadd.f32 %v395_v14, %v394_v18  ;;  %v405_v25 = vmul.f32 %v404_v20, %v752_v0  ;;  %v343_v27 = vstv %s1011_s3 }
  0x77   :  { %v416_v28 = vmul.f32 %v415_v26, %v752_v0  ;;  %v417_v29 = vstv %s1015_s17  ;;  %v333_v32 = vmul.f32 %v589_v22, %v332_v17  ;;  %v354_v35 = vstv %s1019_s18 }
  0x78   :  { %v301_v23 = vadd.f32 %v300_v8, %v290_v15  ;;  %v591_v30 = vpop.eup %590  ;;  %600 = vtanh.f32 %v396_v24  ;;  %v407_v33 = vadd.f32 %v406_v21, %v405_v25  ;;  %v365_v40 = vstv %s1024_s19 }
  0x79   :  { %v593_v34 = vpop.eup %592  ;;  %v418_v36 = vadd.f32 %v417_v29, %v416_v28  ;;  %v344_v38 = vmul.f32 %v591_v30, %v343_v27  ;;  %v376_v43 = vstv %s1030_s20  ;;  %v387_v47 = vstv %s1037_s21 }
  0x7a   :  { %v312_v31 = vadd.f32 %v311_v16, %v301_v23  ;;  %602 = vtanh.f32 %v407_v33  ;;  %v355_v41 = vmul.f32 %v593_v34, %v354_v35  ;;  %v398_v50 = vstv %s530_s22 }
  0x7b   :  { %v595_v39 = vpop.eup %594  ;;  %604 = vtanh.f32 %v418_v36  ;;  %v409_v54 = vstv %s533_s23  ;;  %v420_v59 = vstv %s536_s24  ;;  %v424_v2 = vstv %s1064_s4 }
  0x7c   :  { %v323_v37 = vadd.f32 %v322_v19, %v312_v31  ;;  %v366_v45 = vmul.f32 %v595_v39, %v365_v40 }
  0x7d   :  { %v597_v42 = vpop.eup %596 }
  0x7e   :  { %v334_v0 = vadd.f32 %v333_v32, %v323_v37  ;;  %v377_v49 = vmul.f32 %v597_v42, %v376_v43 }
  0x7f   :  { %v599_v46 = vpop.eup %598 }
  0x80   :  { %v345_v44 = vadd.f32 %v344_v38, %v334_v0  ;;  %v388_v53 = vmul.f32 %v599_v46, %v387_v47 }
  0x82   :  { %v356_v48 = vadd.f32 %v355_v41, %v345_v44  ;;  %v601_v51 = vpop.eup %600 }
  0x83   :  { %v399_v57 = vmul.f32 %v601_v51, %v398_v50 }
  0x84   :  { %v367_v52 = vadd.f32 %v366_v45, %v356_v48  ;;  %v603_v55 = vpop.eup %602 }
  0x85   :  { %v605_v58 = vpop.eup %604  ;;  %v410_v61 = vmul.f32 %v603_v55, %v409_v54 }
  0x86   :  { %v378_v56 = vadd.f32 %v377_v49, %v367_v52  ;;  %v421_v63 = vmul.f32 %v605_v58, %v420_v59 }
  0x88   :  { %v389_v60 = vadd.f32 %v388_v53, %v378_v56 }
  0x8a   :  { %v400_v62 = vadd.f32 %v399_v57, %v389_v60 }
  0x8c   :  { %v411_v1 = vadd.f32 %v410_v61, %v400_v62 }
  0x8e   :  { %v422_v3 = vadd.f32 %v421_v63, %v411_v1 }
  0x90   :  { %v425_v4 = vadd.f32 %v424_v2, %v422_v3 }
  0x92   :  { %426 = vst [vmem:[#allocation11] sm:$0xff] %v425_v4 }
  0x93   :  { %675 = shalt.err (!%p672_p13)
}
  0x94   :  { %s676_s6 = scalar_lea.hbm %s1065_s5, 128 }
  0x95   :  { %p677_p0 = scmp.ne.s32.totalorder %s1065_s5, %s676_s6  ;;  %p680_p1 = scmp.lt.u32.totalorder %s676_s6, %s1065_s5 }
  0x97   :  { %p682_p2 = pnand %p680_p1, %p677_p0 }
  0x99   :  { %685 = shalt.err (!%p682_p2)
}
  0x9a   :  { %436 = dma.vmem_to_hbm [thread:$0]  %s434_s2, 128, %s1065_s5, [#allocation5]  }
  0x9b   :  { %692 = dma.done.wait [#allocation5], 128  }
  0x9c   :  { %693 = vsyncadd [#allocation5], 4294967168 }
  0x9d   :  { %440 = vsyncpa [#allocation4], 1 }
  0x9e   :  { %441 = vsyncpa [#allocation5], 1 }
  0x9f   :  { %442 = vsyncpa [#allocation6], 1 }
  0xa0   :  { %443 = vsyncpa [#allocation9], 1 }

</bundles_post_ra>
